<compile_context>
chip_gen: v7x
topology: tpu7x:2x2x1
jax: 0.10.0
libtpu: 0.0.40
codegen_flags: <defaults>
</compile_context>

<pallas_src>
import jax
import jax.numpy as jnp
from jax import lax
from jax.experimental import pallas as pl
from jax.experimental.pallas import tpu as pltpu


def mlp_survival_kernel(x_ref, w1_ref, b1_ref, w2_ref, b2_ref, w3_ref, b3_ref,
                        o_ref):
    """Fused 3-layer MLP + logsigmoid on one (TB, 11) batch tile (batch -> lanes)."""
    x = x_ref[...].astype(jnp.bfloat16)                        # (TB, 11)

    # Layer 1: (64, TB) = W1 (64,11) . x^T  via transposed-RHS contraction
    # (no explicit transpose op; batch lands on the MXU lane axis).
    h = lax.dot_general(w1_ref[...], x,
                        dimension_numbers=(((1,), (1,)), ((), ())),
                        preferred_element_type=jnp.float32)    # (64, TB) f32
    h = jnp.maximum(h + b1_ref[...], 0.0)                      # bias + ReLU (f32)
    # Dropout(0.3) -> identity at inference.

    # Layer 2: (64, TB) = W2 (64,64) @ h
    h = jnp.dot(w2_ref[...], h.astype(jnp.bfloat16),
                preferred_element_type=jnp.float32)
    h = jnp.maximum(h + b2_ref[...], 0.0)
    # Dropout(0.3) -> identity at inference.

    # Layer 3 (single output unit): VPU multiply + sublane reduction instead of
    # an MXU matmul; keeps the MXU for the two wide layers only. Stays f32.
    z = jnp.sum(h * w3_ref[...], axis=0, keepdims=True) + b3_ref[...]   # (1, TB)

    # Numerically stable logsigmoid(z) = min(z, 0) - log1p(exp(-|z|))
    o_ref[...] = jnp.minimum(z, 0.0) - jnp.log1p(jnp.exp(-jnp.abs(z)))


def _round_up(n, m):
    return ((n + m - 1) // m) * m


def mlp_survival_forward(x, params, *, tb=8192):
    """x: (B, 11) float32 -> (B, 1) float32 predicted log-risk."""
    w1, b1, w2, b2, w3, b3 = params          # x@W+b layout: W (in, out), b (1, out)
    B, n_feat = x.shape
    h1 = w1.shape[1]
    h2 = w2.shape[1]

    # One-time weight layout prep (tiny, outside the per-sample hot path):
    w1T = w1.T.astype(jnp.bfloat16)               # (64, 11)
    w2T = w2.T.astype(jnp.bfloat16)               # (64, 64)
    w3c = w3.reshape(-1, 1).astype(jnp.float32)   # (64, 1) column (VPU layer, f32)
    b1c = b1.reshape(-1, 1).astype(jnp.float32)   # (64, 1)
    b2c = b2.reshape(-1, 1).astype(jnp.float32)   # (64, 1)
    b3c = b3.reshape(1, 1).astype(jnp.float32)    # (1, 1)

    # Batch tiling: tiles must be multiples of 128 lanes; large tiles amortize
    # per-grid-step overhead; >= 2 tiles lets "parallel" span both v7x cores.
    tb = max(128, 128 * (tb // 128))              # guard: multiple of 128
    b128 = _round_up(B, 128)
    if b128 > tb:
        tb_eff = tb
    elif b128 >= 256:
        tb_eff = _round_up(b128 // 2, 128)        # split single tile into ~2
    else:
        tb_eff = b128                             # one 128-lane tile
    B_pad = _round_up(B, tb_eff)
    if B_pad != B:
        x = jnp.pad(x, ((0, B_pad - B), (0, 0)))

    grid = (B_pad // tb_eff,)

    out = pl.pallas_call(
        mlp_survival_kernel,
        out_shape=jax.ShapeDtypeStruct((1, B_pad), jnp.float32),
        grid=grid,
        in_specs=[
            pl.BlockSpec((tb_eff, n_feat), lambda i: (i, 0)),   # x tile (streams)
            pl.BlockSpec((h1, n_feat), lambda i: (0, 0)),       # W1^T (resident)
            pl.BlockSpec((h1, 1), lambda i: (0, 0)),            # b1
            pl.BlockSpec((h2, h1), lambda i: (0, 0)),           # W2^T
            pl.BlockSpec((h2, 1), lambda i: (0, 0)),            # b2
            pl.BlockSpec((h2, 1), lambda i: (0, 0)),            # w3 column
            pl.BlockSpec((1, 1), lambda i: (0, 0)),             # b3
        ],
        out_specs=pl.BlockSpec((1, tb_eff), lambda i: (0, i)),  # lane-dense output
        compiler_params=pltpu.CompilerParams(
            dimension_semantics=("parallel",),
            vmem_limit_bytes=32 * 1024 * 1024),
    )(x, w1T, b1c, w2T, b2c, w3c, b3c)

    return out[0, :B].reshape(B, 1)


def init_params(key):
    """Deterministic synthetic parameters matching nn.Linear shapes.

    Stored in x @ W + b layout: W (in, out), b (1, out); init mimics PyTorch's
    U(-1/sqrt(in), 1/sqrt(in)).
    """
    def linear(k, fan_in, fan_out):
        kw, kb = jax.random.split(k)
        bound = 1.0 / jnp.sqrt(float(fan_in))
        w = jax.random.uniform(kw, (fan_in, fan_out), jnp.float32, -bound, bound)
        b = jax.random.uniform(kb, (1, fan_out), jnp.float32, -bound, bound)
        return w, b

    k1, k2, k3 = jax.random.split(key, 3)
    w1, b1 = linear(k1, 11, 64)
    w2, b2 = linear(k2, 64, 64)
    w3, b3 = linear(k3, 64, 1)
    return (w1, b1, w2, b2, w3, b3)


def reference_forward(x, params):
    """Pure-JAX f32 reference for correctness checking."""
    w1, b1, w2, b2, w3, b3 = params
    h = jnp.maximum(x @ w1 + b1, 0.0)
    h = jnp.maximum(h @ w2 + b2, 0.0)
    z = h @ w3 + b3
    return jax.nn.log_sigmoid(z)


if __name__ == "__main__":
    key = jax.random.PRNGKey(0)
    kx, kx2, kp = jax.random.split(key, 3)

    N_FEAT = 11
    params = init_params(kp)

    # Small sanity shape (B=2): exercises padding up to one 128-lane tile.
    B = 2
    x = jax.random.normal(kx, (B, N_FEAT), dtype=jnp.float32)
    out = jax.block_until_ready(mlp_survival_forward(x, params))
    ref = reference_forward(x, params)
    assert out.shape == (B, 1), out.shape
    assert bool(jnp.all(jnp.isfinite(out)))
    # bf16 matmul path vs f32 reference -> loose tolerance.
    assert jnp.allclose(out, ref, atol=5e-2, rtol=5e-2), (out, ref)

    # Larger batch with default tb: exercises the 2-tile (megacore) split,
    # non-multiple-of-tile padding and output slicing.
    B2 = 300
    x2 = jax.random.normal(kx2, (B2, N_FEAT), dtype=jnp.float32)
    out2 = jax.block_until_ready(mlp_survival_forward(x2, params))
    ref2 = reference_forward(x2, params)
    assert out2.shape == (B2, 1), out2.shape
    assert jnp.allclose(out2, ref2, atol=5e-2, rtol=5e-2)

    # Same batch with an unaligned caller-provided tb: exercises the 128-lane guard.
    out3 = jax.block_until_ready(mlp_survival_forward(x2, params, tb=200))
    assert out3.shape == (B2, 1), out3.shape
    assert jnp.allclose(out3, ref2, atol=5e-2, rtol=5e-2)

    print("KERNEL_OK")
</pallas_src>

<mosaic_0001>
module attributes {stable_mosaic.version = 11 : i64} {
  func.func @mlp_survival_kernel(%arg0: i32, %arg1: memref<128x11xf32, #tpu.memory_space<vmem>>, %arg2: memref<64x11xbf16, #tpu.memory_space<vmem>>, %arg3: memref<64x1xf32, #tpu.memory_space<vmem>>, %arg4: memref<64x64xbf16, #tpu.memory_space<vmem>>, %arg5: memref<64x1xf32, #tpu.memory_space<vmem>>, %arg6: memref<64x1xf32, #tpu.memory_space<vmem>>, %arg7: memref<1x1xf32, #tpu.memory_space<vmem>>, %arg8: memref<1x128xf32, #tpu.memory_space<vmem>>) attributes {dimension_semantics = [#tpu.dimension_semantics<parallel>], iteration_bounds = array<i64: 1>, scalar_prefetch = 0 : i64, scratch_operands = 0 : i64, tpu.core_type = #tpu.core_type<tc>, window_params = [{transform_indices = @transform_0, window_bounds = array<i64: 128, 11>}, {pipeline_mode = #tpu.pipeline_mode<synchronous>, transform_indices = @transform_1, window_bounds = array<i64: 64, 11>}, {pipeline_mode = #tpu.pipeline_mode<synchronous>, transform_indices = @transform_2, window_bounds = array<i64: 64, 1>}, {pipeline_mode = #tpu.pipeline_mode<synchronous>, transform_indices = @transform_3, window_bounds = array<i64: 64, 64>}, {pipeline_mode = #tpu.pipeline_mode<synchronous>, transform_indices = @transform_4, window_bounds = array<i64: 64, 1>}, {pipeline_mode = #tpu.pipeline_mode<synchronous>, transform_indices = @transform_5, window_bounds = array<i64: 64, 1>}, {pipeline_mode = #tpu.pipeline_mode<synchronous>, transform_indices = @transform_6, window_bounds = array<i64: 1, 1>}, {transform_indices = @transform_7, window_bounds = array<i64: 1, 128>}]} {
    %c0 = arith.constant 0 : index
    %c0_0 = arith.constant 0 : index
    %0 = vector.load %arg1[%c0, %c0_0] : memref<128x11xf32, #tpu.memory_space<vmem>>, vector<128x11xf32>
    %1 = arith.truncf %0 : vector<128x11xf32> to vector<128x11xbf16>
    %c0_1 = arith.constant 0 : index
    %c0_2 = arith.constant 0 : index
    %2 = vector.load %arg2[%c0_1, %c0_2] : memref<64x11xbf16, #tpu.memory_space<vmem>>, vector<64x11xbf16>
    %cst = arith.constant dense<0.000000e+00> : vector<64x128xf32>
    %3 = tpu.matmul %2, %1, %cst {dimension_numbers = #tpu.dot_dimension_numbers<[1], [1], [0], [0], [0, 0, 1, 0], [], []>} : vector<64x11xbf16>, vector<128x11xbf16>, vector<64x128xf32> -> vector<64x128xf32>
    %c0_3 = arith.constant 0 : index
    %c0_4 = arith.constant 0 : index
    %4 = vector.load %arg3[%c0_3, %c0_4] : memref<64x1xf32, #tpu.memory_space<vmem>>, vector<64x1xf32>
    %5 = vector.broadcast %4 : vector<64x1xf32> to vector<64x128xf32>
    %6 = arith.addf %3, %5 : vector<64x128xf32>
    %cst_5 = arith.constant 0.000000e+00 : f32
    %7 = vector.broadcast %cst_5 : f32 to vector<64x128xf32>
    %8 = arith.maximumf %6, %7 : vector<64x128xf32>
    %c0_6 = arith.constant 0 : index
    %c0_7 = arith.constant 0 : index
    %9 = vector.load %arg4[%c0_6, %c0_7] : memref<64x64xbf16, #tpu.memory_space<vmem>>, vector<64x64xbf16>
    %10 = arith.truncf %8 : vector<64x128xf32> to vector<64x128xbf16>
    %cst_8 = arith.constant dense<0.000000e+00> : vector<64x128xf32>
    %11 = tpu.matmul %9, %10, %cst_8 {dimension_numbers = #tpu.dot_dimension_numbers<[1], [0], [0], [1], [0, 0, 1, 1], [], []>} : vector<64x64xbf16>, vector<64x128xbf16>, vector<64x128xf32> -> vector<64x128xf32>
    %c0_9 = arith.constant 0 : index
    %c0_10 = arith.constant 0 : index
    %12 = vector.load %arg5[%c0_9, %c0_10] : memref<64x1xf32, #tpu.memory_space<vmem>>, vector<64x1xf32>
    %13 = vector.broadcast %12 : vector<64x1xf32> to vector<64x128xf32>
    %14 = arith.addf %11, %13 : vector<64x128xf32>
    %cst_11 = arith.constant 0.000000e+00 : f32
    %15 = vector.broadcast %cst_11 : f32 to vector<64x128xf32>
    %16 = arith.maximumf %14, %15 : vector<64x128xf32>
    %c0_12 = arith.constant 0 : index
    %c0_13 = arith.constant 0 : index
    %17 = vector.load %arg6[%c0_12, %c0_13] : memref<64x1xf32, #tpu.memory_space<vmem>>, vector<64x1xf32>
    %18 = vector.broadcast %17 : vector<64x1xf32> to vector<64x128xf32>
    %19 = arith.mulf %16, %18 : vector<64x128xf32>
    %cst_14 = arith.constant dense<0.000000e+00> : vector<128xf32>
    %20 = vector.multi_reduction <add>, %19, %cst_14 [0] : vector<64x128xf32> to vector<128xf32>
    %21 = vector.shape_cast %20 : vector<128xf32> to vector<1x128xf32>
    %c0_15 = arith.constant 0 : index
    %c0_16 = arith.constant 0 : index
    %22 = vector.load %arg7[%c0_15, %c0_16] : memref<1x1xf32, #tpu.memory_space<vmem>>, vector<1x1xf32>
    %23 = vector.broadcast %22 : vector<1x1xf32> to vector<1x128xf32>
    %24 = arith.addf %21, %23 : vector<1x128xf32>
    %cst_17 = arith.constant 0.000000e+00 : f32
    %25 = vector.broadcast %cst_17 : f32 to vector<1x128xf32>
    %26 = arith.minimumf %24, %25 : vector<1x128xf32>
    %27 = math.absf %24 : vector<1x128xf32>
    %cst_18 = arith.constant 0.000000e+00 : f32
    %28 = vector.broadcast %cst_18 : f32 to vector<1x128xf32>
    %29 = arith.subf %28, %27 : vector<1x128xf32>
    %30 = math.exp %29 : vector<1x128xf32>
    %31 = math.log1p %30 : vector<1x128xf32>
    %32 = arith.subf %26, %31 : vector<1x128xf32>
    %c0_19 = arith.constant 0 : index
    %c0_20 = arith.constant 0 : index
    %33 = vector.load %arg8[%c0_19, %c0_20] : memref<1x128xf32, #tpu.memory_space<vmem>>, vector<1x128xf32>
    tpu.vector_store %arg8[%c0_19, %c0_20], %32 {strides = array<i32>} : memref<1x128xf32, #tpu.memory_space<vmem>>, vector<1x128xf32>,
    return
  }
  func.func @transform_0(%arg0: i32) -> (i32, i32) {
    %c0_i32 = arith.constant 0 : i32
    %c0_i32_0 = arith.constant 0 : i32
    return %arg0, %c0_i32 : i32, i32
  }
  func.func @transform_1(%arg0: i32) -> (i32, i32) {
    %c0_i32 = arith.constant 0 : i32
    %c0_i32_0 = arith.constant 0 : i32
    %c0_i32_1 = arith.constant 0 : i32
    return %c0_i32, %c0_i32_0 : i32, i32
  }
  func.func @transform_2(%arg0: i32) -> (i32, i32) {
    %c0_i32 = arith.constant 0 : i32
    %c0_i32_0 = arith.constant 0 : i32
    %c0_i32_1 = arith.constant 0 : i32
    return %c0_i32, %c0_i32_0 : i32, i32
  }
  func.func @transform_3(%arg0: i32) -> (i32, i32) {
    %c0_i32 = arith.constant 0 : i32
    %c0_i32_0 = arith.constant 0 : i32
    %c0_i32_1 = arith.constant 0 : i32
    return %c0_i32, %c0_i32_0 : i32, i32
  }
  func.func @transform_4(%arg0: i32) -> (i32, i32) {
    %c0_i32 = arith.constant 0 : i32
    %c0_i32_0 = arith.constant 0 : i32
    %c0_i32_1 = arith.constant 0 : i32
    return %c0_i32, %c0_i32_0 : i32, i32
  }
  func.func @transform_5(%arg0: i32) -> (i32, i32) {
    %c0_i32 = arith.constant 0 : i32
    %c0_i32_0 = arith.constant 0 : i32
    %c0_i32_1 = arith.constant 0 : i32
    return %c0_i32, %c0_i32_0 : i32, i32
  }
  func.func @transform_6(%arg0: i32) -> (i32, i32) {
    %c0_i32 = arith.constant 0 : i32
    %c0_i32_0 = arith.constant 0 : i32
    %c0_i32_1 = arith.constant 0 : i32
    return %c0_i32, %c0_i32_0 : i32, i32
  }
  func.func @transform_7(%arg0: i32) -> (i32, i32) {
    %c0_i32 = arith.constant 0 : i32
    %c0_i32_0 = arith.constant 0 : i32
    return %c0_i32, %arg0 : i32, i32
  }
}

</mosaic_0001>

<bundles_post_ra>
// kernel: tpu_custom_call.1
= control target key start
LH: loop header
LB: loop body
LE: loop exit
PB: predicated region body
PF: predicated region fallthrough
CT: control target
= control target key end

     0   :  { %s865_s0 = inlined_call_operand.vmem [shape: f32[128,11], index: 0, kind: input, shape index: {}]   ;;  %s866_s1 = inlined_call_operand.vmem [shape: bf16[64,11], index: 1, kind: input, shape index: {}]   ;;  %s867_s2 = inlined_call_operand.vmem [shape: f32[64,1], index: 2, kind: input, shape index: {}]   ;;  %s868_s3 = inlined_call_operand.vmem [shape: bf16[64,64], index: 3, kind: input, shape index: {}]   ;;  %s869_s4 = inlined_call_operand.vmem [shape: f32[64,1], index: 4, kind: input, shape index: {}]   ;;  %s870_s5 = inlined_call_operand.vmem [shape: f32[64,1], index: 5, kind: input, shape index: {}]   ;;  %s871_s6 = inlined_call_operand.<no memory space> [shape: f32[1,1], index: 6, kind: input, shape index: {}]   ;;  %s872_s7 = inlined_call_operand.hbm [shape: f32[1,128], index: 7, kind: output, shape index: {}]  }
   0x1   :  { %v12_v0 = vstv %s871_s6 }
   0x2   :  { %13 = vst [vmem:[#allocation2] sm:$0x1] %v12_v0 }
   0x3   :  { %v30_v1 = vld [vmem:[%s865_s0] sm:$0xff]  ;;  %v31_v2 = vld [vmem:[%s865_s0 + $0x8] sm:$0xff]  ;;  %vm130_vm0 = vcmask 89088   ;;  %v32_v3 = vld [vmem:[%s865_s0 + $0x10] sm:$0xff]  ;;  %v640_v6 = vmov 0  }
   0x4   :  { %v46_v4 = vpack.c.bf16 %v31_v2, %v30_v1  ;;  %v33_v5 = vld [vmem:[%s865_s0 + $0x18] sm:$0xff]  ;;  %602 = vset.pattern.permute.xlu0 %v640_v6  ;;  %603 = vset.pattern.permute.xlu1 %v640_v6  ;;  %v34_v9 = vld [vmem:[%s865_s0 + $0x20] sm:$0xff]  ;;  %v35_v10 = vld [vmem:[%s865_s0 + $0x28] sm:$0xff] }
   0x5   :  { %v47_v7 = vpack.c.bf16 %v33_v5, %v32_v3  ;;  %v604_v11 = vld [vmem:[%s866_s1] sm:$0xff]   ;;  %v48_v13 = vpack.c.bf16 %v35_v10, %v34_v9  ;;  %v64_v15 = vld [vmem:[%s867_s2 + $0x10] sm:$0xff]  ;;  %v63_v16 = vld [vmem:[%s867_s2 + $0x8] sm:$0xff] }
   0x6   :  { %592 = vmatprep.subr.msk.bf16.mxu0 %vm130_vm0, %v46_v4  ;;  %v144_v8 = vsel %vm130_vm0, %v46_v4, 0  ;;  %568 = vmatprep.mubr.msk.bf16.mxu0 %vm130_vm0, %v604_v11  ;;  %v62_v14 = vld [vmem:[%s867_s2] sm:$0xff]  ;;  %v65_v17 = vld [vmem:[%s867_s2 + $0x18] sm:$0xff]  ;;  %v36_v18 = vld [vmem:[%s865_s0 + $0x30] sm:$0xff] }
   0x7   :  { %553 = vmatpush3.bf16.xpose.msra.mxu0 %v144_v8  ;;  %v147_v12 = vsel %vm130_vm0, %v47_v7, 0  ;;  %72 = vperm.xlu0 %602, %v62_v14   ;;  %v37_v19 = vld [vmem:[%s865_s0 + $0x38] sm:$0xff]  ;;  %v66_v20 = vld [vmem:[%s867_s2 + $0x20] sm:$0xff]  ;;  %v67_v21 = vld [vmem:[%s867_s2 + $0x28] sm:$0xff]  ;;  %v150_v22 = vsel %vm130_vm0, %v48_v13, 0 }
   0x8   :  { %593 = vmatprep.subr.msk.bf16.mxu0 %vm130_vm0, %v47_v7  ;;  %82 = vperm.xlu1 %603, %v64_v15   ;;  %v49_v23 = vpack.c.bf16 %v37_v19, %v36_v18  ;;  %v68_v24 = vld [vmem:[%s867_s2 + $0x30] sm:$0xff]  ;;  %v69_v25 = vld [vmem:[%s867_s2 + $0x38] sm:$0xff] }
   0xb   :  { %77 = vperm.xlu0 %602, %v63_v16  }
   0xc   :  { %87 = vperm.xlu1 %603, %v65_v17  }
   0xf   :  { %555 = vmatpush3.bf16.xpose.msra.mxu0 %v147_v12  ;;  %92 = vperm.xlu0 %602, %v66_v20  }
  0x10   :  { %594 = vmatprep.subr.msk.bf16.mxu0 %vm130_vm0, %v48_v13  ;;  %97 = vperm.xlu1 %603, %v67_v21  }
  0x17   :  { %557 = vmatpush3.bf16.xpose.msra.mxu0 %v150_v22 }
  0x18   :  { %14 = vsyncpa [#allocation4], 0  ;;  %595 = vmatprep.subr.msk.bf16.mxu0 %vm130_vm0, %v49_v23  ;;  %v38_v26 = vld [vmem:[%s865_s0 + $0x40] sm:$0xff]  ;;  %v39_v27 = vld [vmem:[%s865_s0 + $0x48] sm:$0xff]  ;;  %102 = vperm.xlu0 %602, %v68_v24   ;;  %v153_v30 = vsel %vm130_vm0, %v49_v23, 0  ;;  %vm320_vm1 = vcmask 523264  }
  0x19   :  { %v252_v28 = vld [vmem:[%s869_s4] sm:$0xff]  ;;  %107 = vperm.xlu1 %603, %v69_v25   ;;  %v253_v29 = vld [vmem:[%s869_s4 + $0x8] sm:$0xff]  ;;  %v50_v31 = vpack.c.bf16 %v39_v27, %v38_v26  ;;  %v254_v32 = vld [vmem:[%s869_s4 + $0x10] sm:$0xff] }
  0x1a   :  { %v255_v33 = vld [vmem:[%s869_s4 + $0x18] sm:$0xff]  ;;  %v40_v34 = vld [vmem:[%s865_s0 + $0x50] sm:$0xff]  ;;  %v406_v36 = vld [vmem:[%s870_s5] sm:$0xff] }
  0x1b   :  { %v41_v35 = vld [vmem:[%s865_s0 + $0x58] sm:$0xff]  ;;  %v407_v37 = vld [vmem:[%s870_s5 + $0x8] sm:$0xff]  ;;  %v156_v38 = vsel %vm130_vm0, %v50_v31, 0  ;;  %v256_v40 = vld [vmem:[%s869_s4 + $0x20] sm:$0xff] }
  0x1c   :  { %262 = vperm.xlu0 %602, %v252_v28   ;;  %v51_v39 = vpack.c.bf16 %v41_v35, %v40_v34  ;;  %v408_v41 = vld [vmem:[%s870_s5 + $0x10] sm:$0xff]  ;;  %v42_v42 = vld [vmem:[%s865_s0 + $0x60] sm:$0xff]  ;;  %v43_v43 = vld [vmem:[%s865_s0 + $0x68] sm:$0xff] }
  0x1d   :  { %267 = vperm.xlu1 %603, %v253_v29   ;;  %v257_v44 = vld [vmem:[%s869_s4 + $0x28] sm:$0xff]  ;;  %v409_v45 = vld [vmem:[%s870_s5 + $0x18] sm:$0xff]  ;;  %v52_v47 = vpack.c.bf16 %v43_v43, %v42_v42  ;;  %v258_v48 = vld [vmem:[%s869_s4 + $0x30] sm:$0xff] }
  0x1e   :  { %v159_v46 = vsel %vm130_vm0, %v51_v39, 0  ;;  %v410_v49 = vld [vmem:[%s870_s5 + $0x20] sm:$0xff]  ;;  %v44_v50 = vld [vmem:[%s865_s0 + $0x70] sm:$0xff]  ;;  %v45_v51 = vld [vmem:[%s865_s0 + $0x78] sm:$0xff] }
  0x1f   :  { %559 = vmatpush3.bf16.xpose.msra.mxu0 %v153_v30  ;;  %v259_v52 = vld [vmem:[%s869_s4 + $0x38] sm:$0xff]  ;;  %v411_v53 = vld [vmem:[%s870_s5 + $0x28] sm:$0xff]  ;;  %v162_v54 = vsel %vm130_vm0, %v52_v47, 0  ;;  %v53_v55 = vpack.c.bf16 %v45_v51, %v44_v50  ;;  %v412_v56 = vld [vmem:[%s870_s5 + $0x30] sm:$0xff] }
  0x20   :  { %596 = vmatprep.subr.msk.bf16.mxu0 %vm130_vm0, %v50_v31  ;;  %272 = vperm.xlu0 %602, %v254_v32   ;;  %v413_v57 = vld [vmem:[%s870_s5 + $0x38] sm:$0xff]  ;;  %v475_v58 = vld [vmem:[#allocation2] sm:$0x1]  ;;  %v605_v60 = vld [vmem:[%s866_s1 + $0x8] sm:$0xff]  }
  0x21   :  { %277 = vperm.xlu1 %603, %v255_v33   ;;  %v165_v59 = vsel %vm130_vm0, %v53_v55, 0  ;;  %v606_v61 = vld [vmem:[%s866_s1 + $0x10] sm:$0xff]   ;;  %v607_v62 = vld [vmem:[%s866_s1 + $0x18] sm:$0xff]   ;;  %v608_v63 = vld [vmem:[%s868_s3] sm:$0xff]  }
  0x22   :  { %584 = vmatprep.mubr.msk.bf16.mxu1 %vm320_vm1, %v608_v63 }
  0x24   :  { %416 = vperm.xlu0 %602, %v406_v36   ;;  %v609_v36 = vld [vmem:[%s868_s3 + $0x8] sm:$0xff]  }
  0x25   :  { %421 = vperm.xlu1 %603, %v407_v37   ;;  %v610_v37 = vld [vmem:[%s868_s3 + $0x10] sm:$0xff]  }
  0x27   :  { %561 = vmatpush3.bf16.xpose.msra.mxu0 %v156_v38  ;;  %v611_v38 = vld [vmem:[%s868_s3 + $0x18] sm:$0xff]   ;;  %s641_s3 = smov [#allocation3]  }
  0x28   :  { %597 = vmatprep.subr.msk.bf16.mxu0 %vm130_vm0, %v51_v39  ;;  %282 = vperm.xlu0 %602, %v256_v40   ;;  %s508_s2 = sshll.u32 %s641_s3, 4  ;;  %s509_s2 = int_to_ptr.vmem [resolvable:$true] %s508_s2 }
  0x29   :  { %426 = vperm.xlu1 %603, %v408_v41   ;;  %s616_s20 = scalar_lea.vmem %s509_s2, 16  ;;  %s620_s21 = scalar_lea.vmem %s509_s2, 32 }
  0x2a   :  { %p617_p0 = scmp.ne.s32.totalorder %s509_s2, %s616_s20  ;;  %p621_p1 = scmp.lt.s32.totalorder %s509_s2, %s509_s2 }
  0x2b   :  { %p622_p2 = scmp.lt.s32.totalorder %s620_s21, %s616_s20 }
  0x2c   :  { %287 = vperm.xlu0 %602, %v257_v44  }
  0x2d   :  { %431 = vperm.xlu1 %603, %v409_v45   ;;  %p623_p3 = por %p622_p2, %p621_p1 }
  0x2f   :  { %563 = vmatpush3.bf16.xpose.msra.mxu0 %v159_v46  ;;  %p624_p4 = pnand %p623_p3, %p617_p0 }
  0x30   :  { %598 = vmatprep.subr.msk.bf16.mxu0 %vm130_vm0, %v52_v47  ;;  %292 = vperm.xlu0 %602, %v258_v48  }
  0x31   :  { %436 = vperm.xlu1 %603, %v410_v49  }
  0x34   :  { %297 = vperm.xlu0 %602, %v259_v52  }
  0x35   :  { %441 = vperm.xlu1 %603, %v411_v53  }
  0x37   :  { %565 = vmatpush3.bf16.xpose.msra.mxu0 %v162_v54 }
  0x38   :  { %599 = vmatprep.subr.msk.bf16.mxu0 %vm130_vm0, %v53_v55  ;;  %446 = vperm.xlu0 %602, %v412_v56  }
  0x39   :  { %451 = vperm.xlu1 %603, %v413_v57  }
  0x3c   :  { %478 = vperm.xlu0 %602, %v475_v58  }
  0x3f   :  { %567 = vmatpush3.bf16.xpose.msra.mxu0 %v165_v59 }
  0x46   :  { %569 = vmatmul.mubr.msk.bf16.vlgmr.msra.gmra.mrb[0].mxu0 %vm130_vm0, %v605_v60 }
  0x47   :  { %572 = vmatprep.mubr.msk.bf16.mxu0 %vm130_vm0, %v606_v61 }
  0x4e   :  { %573 = vmatmul.mubr.msk.bf16.gmra.mrb[4].mxu0 %vm130_vm0, %v607_v62 }
  0x86   :  { %v73_v0 = vpop.permute.xlu0 %72 }
  0x87   :  { %v83_v1 = vpop.permute.xlu1 %82 }
  0x8a   :  { %v78_v2 = vpop.permute.xlu0 %77 }
  0x8b   :  { %v88_v3 = vpop.permute.xlu1 %87 }
  0x8e   :  { %v93_v7 = vpop.permute.xlu0 %92 }
  0x8f   :  { %v98_v12 = vpop.permute.xlu1 %97 }
  0x97   :  { %v103_v19 = vpop.permute.xlu0 %102 }
  0x98   :  { %v108_v24 = vpop.permute.xlu1 %107 }
  0x9b   :  { %v263_v39 = vpop.permute.xlu0 %262 }
  0x9c   :  { %v268_v40 = vpop.permute.xlu1 %267 }
  0x9f   :  { %v273_v41 = vpop.permute.xlu0 %272 }
  0xa0   :  { %v278_v42 = vpop.permute.xlu1 %277 }
  0xa3   :  { %v417_v43 = vpop.permute.xlu0 %416 }
  0xa4   :  { %v422_v44 = vpop.permute.xlu1 %421 }
  0xa7   :  { %v283_v45 = vpop.permute.xlu0 %282 }
  0xa8   :  { %v427_v46 = vpop.permute.xlu1 %426 }
  0xab   :  { %v288_v47 = vpop.permute.xlu0 %287 }
  0xac   :  { %v432_v49 = vpop.permute.xlu1 %431 }
  0xaf   :  { %v293_v58 = vpop.permute.xlu0 %292 }
  0xb0   :  { %v437_v61 = vpop.permute.xlu1 %436 }
 0x119   :  { %v570_v4 = vpop.f32.mrb[0].mxu0 }
 0x11a   :  { %v210_v5 = vadd.f32 %v570_v4, %v83_v1  ;;  %v201_v6 = vpop.f32.mrb[1].mxu0 }
 0x11b   :  { %v202_v8 = vadd.f32 %v201_v6, %v73_v0  ;;  %v571_v9 = vpop.f32.mrb[2].mxu0 }
 0x11c   :  { %v213_v10 = vadd.f32 %v571_v9, %v88_v3  ;;  %v204_v11 = vpop.f32.mrb[3].mxu0  ;;  %v234_v14 = vmax.f32 %v210_v5, 0.0 }
 0x11d   :  { %v205_v13 = vadd.f32 %v204_v11, %v78_v2  ;;  %v232_v16 = vmax.f32 %v202_v8, 0.0  ;;  %v298_v8 = vpop.permute.xlu0 %297 }
 0x11e   :  { %v235_v15 = vmax.f32 %v213_v10, 0.0 }
 0x11f   :  { %v233_v17 = vmax.f32 %v205_v13, 0.0 }
 0x120   :  { %v249_v18 = vpack.c.bf16 %v235_v15, %v234_v14  ;;  %v442_v15 = vpop.permute.xlu1 %441 }
 0x121   :  { %v574_v20 = vpop.f32.mrb[4].mxu0  ;;  %v248_v21 = vpack.c.bf16 %v233_v17, %v232_v16 }
 0x122   :  { %v226_v22 = vadd.f32 %v574_v20, %v103_v19  ;;  %v217_v23 = vpop.f32.mrb[5].mxu0 }
 0x123   :  { %v218_v25 = vadd.f32 %v217_v23, %v93_v7  ;;  %v575_v26 = vpop.f32.mrb[6].mxu0  ;;  %576 = vmatprep.subr.bf16.mxu1 %v248_v21  ;;  %v447_v23 = vpop.permute.xlu0 %446 }
 0x124   :  { %v229_v27 = vadd.f32 %v575_v26, %v108_v24  ;;  %v220_v28 = vpop.f32.mrb[7].mxu0  ;;  %577 = vmatpush3.bf16.msra.mxu1 %v248_v21  ;;  %v238_v30 = vmax.f32 %v226_v22, 0.0  ;;  %v452_v26 = vpop.permute.xlu1 %451 }
 0x125   :  { %v221_v29 = vadd.f32 %v220_v28, %v98_v12  ;;  %578 = vmatprep.subr.bf16.mxu1 %v249_v18  ;;  %v236_v32 = vmax.f32 %v218_v25, 0.0 }
 0x126   :  { %v239_v31 = vmax.f32 %v229_v27, 0.0 }
 0x127   :  { %v237_v33 = vmax.f32 %v221_v29, 0.0  ;;  %v481_v29 = vlaneseq }
 0x128   :  { %v251_v34 = vpack.c.bf16 %v239_v31, %v238_v30  ;;  %579 = vmatpush3.bf16.msra.mxu1 %v249_v18 }
 0x129   :  { %v250_v35 = vpack.c.bf16 %v237_v33, %v236_v32  ;;  %v482_v32 = vshrl.u32 %v481_v29, 7 }
 0x12b   :  { %580 = vmatprep.subr.bf16.mxu1 %v250_v35 }
 0x12c   :  { %581 = vmatpush3.bf16.msra.mxu1 %v250_v35  ;;  %v483_v35 = vsub.s32 0, %v482_v32 }
 0x12d   :  { %582 = vmatprep.subr.bf16.mxu1 %v251_v34 }
 0x130   :  { %583 = vmatpush3.bf16.msra.mxu1 %v251_v34 }
 0x133   :  { %585 = vmatmul.mubr.msk.bf16.vlgmr.msra.gmra.mrb[0].mxu1 %vm320_vm1, %v609_v36 }
 0x134   :  { %588 = vmatprep.mubr.msk.bf16.mxu1 %vm320_vm1, %v610_v37  ;;  %v479_v37 = vpop.permute.xlu0 %478 }
 0x13b   :  { %589 = vmatmul.mubr.msk.bf16.gmra.mrb[4].mxu1 %vm320_vm1, %v611_v38 }
 0x206   :  { %v586_v48 = vpop.f32.mrb[0].mxu1 }
 0x207   :  { %v367_v50 = vpop.f32.mrb[1].mxu1  ;;  %v376_v51 = vadd.f32 %v586_v48, %v273_v41 }
 0x208   :  { %v368_v52 = vadd.f32 %v367_v50, %v263_v39  ;;  %v587_v53 = vpop.f32.mrb[2].mxu1  ;;  %v484_v39 = vrot.slane %v479_v37, %v483_v35 }
 0x209   :  { %v379_v54 = vadd.f32 %v587_v53, %v278_v42  ;;  %v370_v55 = vpop.f32.mrb[3].mxu1  ;;  %v400_v59 = vmax.f32 %v376_v51, 0.0 }
 0x20a   :  { %v398_v56 = vmax.f32 %v368_v52, 0.0  ;;  %v371_v57 = vadd.f32 %v370_v55, %v268_v40 }
 0x20b   :  { %v401_v62 = vmax.f32 %v379_v54, 0.0  ;;  %v456_v3 = vmul.f32 %v427_v46, %v400_v59 }
 0x20c   :  { %v399_v60 = vmax.f32 %v371_v57, 0.0  ;;  %v454_v63 = vmul.f32 %v417_v43, %v398_v56 }
 0x20d   :  { %v457_v9 = vmul.f32 %v432_v49, %v401_v62 }
 0x20e   :  { %v455_v0 = vmul.f32 %v422_v44, %v399_v60  ;;  %v590_v1 = vpop.f32.mrb[4].mxu1 }
 0x20f   :  { %v383_v2 = vpop.f32.mrb[5].mxu1  ;;  %v392_v5 = vadd.f32 %v590_v1, %v293_v58 }
 0x210   :  { %v462_v4 = vadd.f32 %v455_v0, %v454_v63  ;;  %v384_v6 = vadd.f32 %v383_v2, %v283_v45  ;;  %v591_v7 = vpop.f32.mrb[6].mxu1 }
 0x211   :  { %v386_v10 = vpop.f32.mrb[7].mxu1  ;;  %v395_v13 = vadd.f32 %v591_v7, %v298_v8  ;;  %v404_v16 = vmax.f32 %v392_v5, 0.0 }
 0x212   :  { %v463_v11 = vadd.f32 %v462_v4, %v456_v3  ;;  %v402_v12 = vmax.f32 %v384_v6, 0.0  ;;  %v387_v14 = vadd.f32 %v386_v10, %v288_v47 }
 0x213   :  { %v405_v21 = vmax.f32 %v395_v13, 0.0  ;;  %v460_v24 = vmul.f32 %v447_v23, %v404_v16 }
 0x214   :  { %v458_v17 = vmul.f32 %v437_v61, %v402_v12  ;;  %v464_v18 = vadd.f32 %v463_v11, %v457_v9  ;;  %v403_v19 = vmax.f32 %v387_v14, 0.0 }
 0x215   :  { %v461_v27 = vmul.f32 %v452_v26, %v405_v21 }
 0x216   :  { %v465_v20 = vadd.f32 %v464_v18, %v458_v17  ;;  %v459_v22 = vmul.f32 %v442_v15, %v403_v19 }
 0x218   :  { %v466_v25 = vadd.f32 %v465_v20, %v459_v22 }
 0x21a   :  { %v467_v28 = vadd.f32 %v466_v25, %v460_v24 }
 0x21c   :  { %v468_v30 = vadd.f32 %v467_v28, %v461_v27 }
 0x21e   :  { %v469_v31 = vrot.slane %v468_v30, 4 }
 0x220   :  { %v470_v33 = vadd.f32 %v469_v31, %v468_v30 }
 0x222   :  { %v471_v34 = vrot.slane %v470_v33, 2 }
 0x224   :  { %v472_v36 = vadd.f32 %v471_v34, %v470_v33 }
 0x226   :  { %v473_v38 = vrot.slane %v472_v36, 1 }
 0x228   :  { %v474_v40 = vadd.f32 %v473_v38, %v472_v36 }
 0x22a   :  { %v485_v41 = vadd.f32 %v484_v39, %v474_v40 }
 0x22c   :  { %v487_v42 = vand.u32 2147483647, %v485_v41  ;;  %v486_v53 = vmin.f32 %v485_v41, 0.0 }
 0x22e   :  { %v488_v43 = vsub.f32 0.0, %v487_v42 }
 0x230   :  { %v489_v44 = vmul.f32 1.442695, %v488_v43 }
 0x232   :  { %612 = vpow2.f32 %v489_v44 }
 0x23c   :  { %v613_v45 = vpop.eup %612 }
 0x23d   :  { %v491_v46 = vadd.f32 1.0, %v613_v45  ;;  %v494_v47 = vmul.f32 -0.5, %v613_v45  ;;  %v497_v49 = vand.u32 2147483647, %v613_v45 }
 0x23f   :  { %614 = vlog2.f32 %v491_v46  ;;  %v495_v48 = vadd.f32 1.0, %v494_v47  ;;  %vm498_vm2 = vcmp.lt.f32.partialorder %v497_v49, 0.0004427343 }
 0x241   :  { %v496_v52 = vmul.f32 %v613_v45, %v495_v48 }
 0x249   :  { %v615_v50 = vpop.eup %614 }
 0x24a   :  { %v493_v51 = vmul.f32 0.6931472, %v615_v50 }
 0x24c   :  { %v499_v54 = vsel %vm498_vm2, %v496_v52, %v493_v51 }
 0x24d   :  { %v500_v55 = vsub.f32 %v486_v53, %v499_v54 }
 0x24f   :  { %501 = vst [vmem:[#allocation3] sm:$0x1] %v500_v55 }
 0x250   :  { %627 = shalt.err (!%p624_p4)
}
 0x251   :  { %s628_s24 = scalar_lea.hbm %s872_s7, 16 }
 0x252   :  { %p629_p5 = scmp.ne.s32.totalorder %s872_s7, %s628_s24  ;;  %p632_p6 = scmp.lt.u32.totalorder %s628_s24, %s872_s7 }
 0x254   :  { %p634_p7 = pnand %p632_p6, %p629_p5 }
 0x256   :  { %637 = shalt.err (!%p634_p7)
}
 0x257   :  { %511 = dma.vmem_to_hbm [thread:$0]  %s509_s2, 16, %s872_s7, [#allocation4]  }
 0x258   :  { %638 = dma.done.wait [#allocation4], 16  }
 0x259   :  { %639 = vsyncadd [#allocation4], 4294967280 }
 0x25a   :  { %515 = vsyncpa [#allocation4], 1 }

</bundles_post_ra>
